<compile_context>
chip_gen: v7x
topology: tpu7x:2x2x1
jax: 0.10.0
libtpu: 0.0.40
codegen_flags: <defaults>
</compile_context>

<pallas_src>
import functools

import jax
import jax.numpy as jnp
import numpy as np
from jax import lax
from jax.experimental import pallas as pl
from jax.experimental.pallas import tpu as pltpu

_NEG = -1e30           # finite "minus infinity" sentinel
_INT_MIN = -(2 ** 31)  # packed-key sentinel (never selected)


def _round_up(x: int, m: int) -> int:
    return (x + m - 1) // m * m


def _cdiv(a: int, b: int) -> int:
    return -(-a // b)


def _router_kernel(*refs, top_k: int, num_experts: int, e_pad: int,
                   use_sigmoid: bool, has_bias: bool, idx_bits: int):
    if has_bias:
        x_ref, w_ref, bias_ref, out_ref = refs
    else:
        x_ref, w_ref, out_ref = refs
        bias_ref = None

    # Gate linear on the MXU: cast activations to the weight dtype in VMEM
    # (no-op when x is already bf16), accumulate in f32.
    logits = jnp.dot(x_ref[...].astype(w_ref.dtype), w_ref[...],
                     preferred_element_type=jnp.float32)          # (T, e_pad)

    pad = e_pad != num_experts
    eidx = lax.broadcasted_iota(jnp.int32, (1, e_pad), 1)         # (1, e_pad)
    valid = (eidx < num_experts) if pad else None

    idx_mask = (1 << idx_bits) - 1                  # python int
    hi_mask = jnp.int32(-(1 << idx_bits))           # clears the low idx_bits bits
    rev_idx = idx_mask - eidx                       # lower index -> larger low bits

    inv = None
    scores = None
    if use_sigmoid:
        base = jax.nn.sigmoid(logits)               # positive
        if has_bias:
            scores = base
    else:
        ml = jnp.where(valid, logits, _NEG) if pad else logits
        m = jnp.max(ml, axis=-1, keepdims=True)
        e = jnp.exp(logits - m)
        if pad:
            e = jnp.where(valid, e, 0.0)            # padded experts never contribute
        s = jnp.sum(e, axis=-1, keepdims=True)
        inv = pl.reciprocal(s, approx=True)         # EUP slot; s >= 1 so seed is sane
        inv = inv * (2.0 - s * inv)                 # one Newton step -> ~f32 accurate
        base = e                                    # softmax is monotone in e (positive)
        if has_bias:
            scores = e * inv                        # exact scores for bias add / gather

    # Packed selection key: one int32 per (token, expert).
    if has_bias:
        work = scores + bias_ref[...]               # may be negative
        bits = pltpu.bitcast(work, jnp.int32)
        mono = jnp.where(bits < 0, bits ^ jnp.int32(0x7FFFFFFF), bits)
    else:
        mono = pltpu.bitcast(base, jnp.int32)       # positive floats order as int32
    key = (mono & hi_mask) | rev_idx
    if pad:
        key = jnp.where(valid, key, jnp.int32(_INT_MIN))   # never select padding

    # Lane-dense packed output block: [values | indices(as f32) | zeros].
    out_ref[...] = jnp.zeros_like(out_ref)

    vals = []
    for k in range(top_k):                          # top_k is small (2-8), static unroll
        kmax = jnp.max(key, axis=-1, keepdims=True)            # SINGLE lane reduction
        idx = idx_mask - (kmax & idx_mask)                     # (T, 1) selected expert
        if has_bias:
            # exact (un-biased) score at the selected expert
            val = jnp.sum(jnp.where(eidx == idx, scores, 0.0),
                          axis=-1, keepdims=True)              # one extra reduction
        else:
            val = pltpu.bitcast(kmax & hi_mask, jnp.float32)   # truncated base value
        if k + 1 < top_k:
            key = jnp.where(key == kmax, jnp.int32(_INT_MIN), key)  # knock out winner
        out_ref[:, top_k + k:top_k + k + 1] = idx.astype(jnp.float32)
        vals.append(val)

    if use_sigmoid:
        d = vals[0]
        for v in vals[1:]:
            d = d + v
        d = d + 1e-20
        for k in range(top_k):
            out_ref[:, k:k + 1] = vals[k] / d       # exact divide (d may be tiny)
    else:
        if not has_bias:
            vals = [v * inv for v in vals]          # normalize only the selected values
        for k in range(top_k):
            out_ref[:, k:k + 1] = vals[k]


def token_choice_topk_router(x, gate_weight, expert_bias=None, *,
                             top_k: int, use_sigmoid: bool = False,
                             route_scaling_factor: float = 1.0,
                             tile_tokens: int = 512,
                             compute_dtype=jnp.bfloat16,
                             vmem_limit_bytes=None):
    """x: (N, dim); gate_weight: (num_experts, dim) (nn.Linear convention)."""
    N, D = x.shape
    E = gate_weight.shape[0]
    assert 0 < top_k <= E

    e_pad = _round_up(E, 128)                   # lane-align the expert axis
    d_pad = _round_up(D, 128)                   # lane-align the model dim
    idx_bits = max(1, (E - 1).bit_length())     # bits needed to encode an expert index
    out_cols = max(128, _round_up(2 * top_k, 128))

    # VMEM budget per generation (v5e/v6e: 128 MiB physical, v7x: 64 MiB).
    if vmem_limit_bytes is None:
        try:
            cap = int(pltpu.get_tpu_info().vmem_capacity_bytes)
        except Exception:
            cap = 64 * 1024 * 1024
        vmem_limit_bytes = min(64 * 1024 * 1024, (cap * 3) // 4)

    # Token tile: multiple of 8 sublanes; >= 2 grid steps whenever possible so
    # dimension_semantics=("parallel",) can shard across v7x's two TensorCores;
    # no token-axis padding (Pallas handles the ragged last block).
    tile = max(8, min(_round_up(tile_tokens, 8), _round_up(N, 8)))
    if N > 8:
        tile = min(tile, _round_up(_cdiv(N, 2), 8))
    # Clamp tile to the VMEM budget (double-buffered x rows + f32 intermediates + weight).
    x_dtype = x.dtype if d_pad == D else jnp.dtype(compute_dtype)
    row_bytes = 2 * d_pad * jnp.dtype(x_dtype).itemsize + 8 * e_pad * 4
    w_bytes = 2 * d_pad * e_pad * jnp.dtype(compute_dtype).itemsize
    avail = max(row_bytes * 8, int(vmem_limit_bytes * 0.7) - w_bytes)
    tile = min(tile, max(8, (avail // row_bytes) // 8 * 8))
    grid_n = _cdiv(N, tile)

    # Only copy x when the model dim needs lane padding; fuse the bf16 cast into it.
    x_in = x
    if d_pad != D:
        x_in = jnp.pad(x.astype(compute_dtype), ((0, 0), (0, d_pad - D)))

    w_t = gate_weight.T.astype(compute_dtype)   # (D, E)
    if d_pad != D or e_pad != E:
        w_t = jnp.pad(w_t, ((0, d_pad - D), (0, e_pad - E)))

    has_bias = expert_bias is not None
    operands = [x_in, w_t]
    if has_bias:
        bias = expert_bias.astype(jnp.float32).reshape(1, E)
        if e_pad != E:
            bias = jnp.pad(bias, ((0, 0), (0, e_pad - E)))
        operands.append(bias)

    kernel = functools.partial(
        _router_kernel, top_k=top_k, num_experts=E, e_pad=e_pad,
        use_sigmoid=use_sigmoid, has_bias=has_bias, idx_bits=idx_bits)

    out_shape = jax.ShapeDtypeStruct((N, out_cols), jnp.float32)
    out_spec = pl.BlockSpec((tile, out_cols), lambda i: (i, 0))

    def make_in_specs(single_buffer_invariants: bool):
        x_spec = pl.BlockSpec((tile, d_pad), lambda i: (i, 0))
        if single_buffer_invariants:
            # Grid-invariant blocks: fetched once, no need for a second buffer.
            w_spec = pl.BlockSpec((d_pad, e_pad), lambda i: (0, 0),
                                  pipeline_mode=pl.Buffered(1))
            b_spec = pl.BlockSpec((1, e_pad), lambda i: (0, 0),
                                  pipeline_mode=pl.Buffered(1))
        else:
            w_spec = pl.BlockSpec((d_pad, e_pad), lambda i: (0, 0))
            b_spec = pl.BlockSpec((1, e_pad), lambda i: (0, 0))
        specs = [x_spec, w_spec]
        if has_bias:
            specs.append(b_spec)
        return specs

    def run(single_buffer_invariants: bool):
        return pl.pallas_call(
            kernel,
            out_shape=out_shape,
            grid_spec=pltpu.PrefetchScalarGridSpec(
                num_scalar_prefetch=0,
                grid=(grid_n,),
                in_specs=make_in_specs(single_buffer_invariants),
                out_specs=out_spec),
            compiler_params=pltpu.CompilerParams(
                dimension_semantics=("parallel",),   # no resident accumulator
                vmem_limit_bytes=int(vmem_limit_bytes)),
        )(*operands)

    try:
        out = run(True)
    except Exception:
        # Fallback if this JAX version rejects pipeline_mode=pl.Buffered(1)
        # on top-level pallas_call BlockSpecs (default double-buffering).
        out = run(False)

    top_vals = out[:, :top_k]
    top_idx = out[:, top_k:2 * top_k].astype(jnp.int32)   # indices exact in f32

    # Glue: group tokens by expert + per-expert counts.
    # TODO(synk): stable argsort / bincount have no clean Pallas TPU primitive; kept in JAX.
    flat_idx = top_idx.reshape(-1)                                   # (N*top_k,)
    perm = jnp.argsort(flat_idx, stable=True)                        # (N*top_k,)
    top_scores = top_vals.reshape(-1)[perm] * route_scaling_factor   # (N*top_k,)
    token_indices = perm // top_k                                    # (N*top_k,)
    num_tokens_per_expert = jnp.bincount(flat_idx, length=E).astype(jnp.int32)
    return top_scores, token_indices, num_tokens_per_expert


def _reference(x, gate_weight, expert_bias, *, top_k, use_sigmoid,
               route_scaling_factor, compute_dtype=jnp.bfloat16):
    logits = jnp.dot(x.astype(compute_dtype), gate_weight.T.astype(compute_dtype),
                     preferred_element_type=jnp.float32)
    scores = jax.nn.sigmoid(logits) if use_sigmoid else jax.nn.softmax(logits, axis=1)
    if expert_bias is None:
        top_scores, idx = lax.top_k(scores, top_k)
    else:
        _, idx = lax.top_k(scores + expert_bias[None, :].astype(jnp.float32), top_k)
        top_scores = jnp.take_along_axis(scores, idx, axis=1)
    if use_sigmoid:
        top_scores = top_scores / (top_scores.sum(-1, keepdims=True) + 1e-20)
    E = gate_weight.shape[0]
    counts = jnp.bincount(idx.reshape(-1), length=E).astype(jnp.int32)
    perm = jnp.argsort(idx.reshape(-1), stable=True)
    ts = top_scores.reshape(-1)[perm] * route_scaling_factor
    return ts, perm // top_k, counts


if __name__ == "__main__":
    key = jax.random.PRNGKey(0)
    # Small deterministic configs covering all four kernel paths:
    #   softmax/no-bias, sigmoid/bias, softmax/bias (ragged grid), sigmoid/no-bias.
    configs = [
        dict(N=16, dim=32,  E=8, top_k=2, use_sigmoid=False, with_bias=False, scale=1.0),
        dict(N=16, dim=32,  E=8, top_k=3, use_sigmoid=True,  with_bias=True,  scale=2.5),
        dict(N=20, dim=128, E=8, top_k=2, use_sigmoid=False, with_bias=True,  scale=1.0),
        dict(N=20, dim=128, E=8, top_k=4, use_sigmoid=True,  with_bias=False, scale=0.5),
    ]
    for cfg in configs:
        kx, kw, kb, key = jax.random.split(key, 4)
        x = jax.random.normal(kx, (cfg["N"], cfg["dim"]), dtype=jnp.float32)
        gate_w = (cfg["dim"] ** -0.5) * jax.random.normal(
            kw, (cfg["E"], cfg["dim"]), dtype=jnp.float32)
        ebias = (0.1 * jax.random.normal(kb, (cfg["E"],), dtype=jnp.float32)
                 if cfg["with_bias"] else None)

        out = token_choice_topk_router(
            x, gate_w, ebias, top_k=cfg["top_k"], use_sigmoid=cfg["use_sigmoid"],
            route_scaling_factor=cfg["scale"])
        top_scores, token_indices, num_tokens_per_expert = jax.block_until_ready(out)

        ts_ref, ti_ref, cnt_ref = _reference(
            x, gate_w, ebias, top_k=cfg["top_k"], use_sigmoid=cfg["use_sigmoid"],
            route_scaling_factor=cfg["scale"])

        np.testing.assert_allclose(np.asarray(top_scores), np.asarray(ts_ref),
                                   rtol=1e-4, atol=1e-5)
        np.testing.assert_array_equal(np.asarray(token_indices), np.asarray(ti_ref))
        np.testing.assert_array_equal(np.asarray(num_tokens_per_expert),
                                      np.asarray(cnt_ref))

    print("KERNEL_OK")
</pallas_src>

<mosaic_0001>
module attributes {stable_mosaic.version = 11 : i64} {
  func.func @_router_kernel(%arg0: i32, %arg1: memref<8x128xbf16, #tpu.memory_space<vmem>>, %arg2: memref<128x128xbf16, #tpu.memory_space<vmem>>, %arg3: memref<8x128xf32, #tpu.memory_space<vmem>>) attributes {dimension_semantics = [#tpu.dimension_semantics<parallel>], iteration_bounds = array<i64: 2>, scalar_prefetch = 0 : i64, scratch_operands = 0 : i64, tpu.core_type = #tpu.core_type<tc>, window_params = [{transform_indices = @transform_0, window_bounds = array<i64: 8, 128>}, {pipeline_mode = #tpu.pipeline_mode<synchronous>, transform_indices = @transform_1, window_bounds = array<i64: 128, 128>}, {transform_indices = @transform_2, window_bounds = array<i64: 8, 128>}]} {
    %c0 = arith.constant 0 : index
    %c0_0 = arith.constant 0 : index
    %0 = vector.load %arg1[%c0, %c0_0] : memref<8x128xbf16, #tpu.memory_space<vmem>>, vector<8x128xbf16>
    %c0_1 = arith.constant 0 : index
    %c0_2 = arith.constant 0 : index
    %1 = vector.load %arg2[%c0_1, %c0_2] : memref<128x128xbf16, #tpu.memory_space<vmem>>, vector<128x128xbf16>
    %cst = arith.constant dense<0.000000e+00> : vector<8x128xf32>
    %2 = tpu.matmul %0, %1, %cst {dimension_numbers = #tpu.dot_dimension_numbers<[1], [0], [0], [1], [0, 0, 1, 1], [], []>} : vector<8x128xbf16>, vector<128x128xbf16>, vector<8x128xf32> -> vector<8x128xf32>
    %3 = tpu.iota {dimensions = array<i32: 1>} : vector<1x128xi32>
    %c8_i32 = arith.constant 8 : i32
    %4 = vector.broadcast %c8_i32 : i32 to vector<1x128xi32>
    %5 = arith.cmpi slt, %3, %4 : vector<1x128xi32>
    %c7_i32 = arith.constant 7 : i32
    %6 = vector.broadcast %c7_i32 : i32 to vector<1x128xi32>
    %7 = arith.subi %6, %3 : vector<1x128xi32>
    %cst_3 = arith.constant -1.000000e+30 : f32
    %8 = vector.shape_cast %5 : vector<1x128xi1> to vector<1x128xi1>
    %9 = vector.broadcast %8 : vector<1x128xi1> to vector<8x128xi1>
    %10 = vector.broadcast %cst_3 : f32 to vector<8x128xf32>
    %11 = arith.select %9, %2, %10 : vector<8x128xi1>, vector<8x128xf32>
    %cst_4 = arith.constant dense<0xFF800000> : vector<8xf32>
    %12 = vector.multi_reduction <maximumf>, %11, %cst_4 [1] : vector<8x128xf32> to vector<8xf32>
    %13 = vector.shape_cast %12 : vector<8xf32> to vector<8x1xf32>
    %14 = vector.broadcast %13 : vector<8x1xf32> to vector<8x128xf32>
    %15 = arith.subf %2, %14 : vector<8x128xf32>
    %16 = math.exp %15 : vector<8x128xf32>
    %cst_5 = arith.constant 0.000000e+00 : f32
    %17 = vector.shape_cast %5 : vector<1x128xi1> to vector<1x128xi1>
    %18 = vector.broadcast %17 : vector<1x128xi1> to vector<8x128xi1>
    %19 = vector.broadcast %cst_5 : f32 to vector<8x128xf32>
    %20 = arith.select %18, %16, %19 : vector<8x128xi1>, vector<8x128xf32>
    %cst_6 = arith.constant dense<0.000000e+00> : vector<8xf32>
    %21 = vector.multi_reduction <add>, %20, %cst_6 [1] : vector<8x128xf32> to vector<8xf32>
    %22 = vector.shape_cast %21 : vector<8xf32> to vector<8x1xf32>
    %23 = tpu.reciprocal %22 {approx = true} : vector<8x1xf32> -> vector<8x1xf32>
    %24 = arith.mulf %22, %23 : vector<8x1xf32>
    %cst_7 = arith.constant 2.000000e+00 : f32
    %25 = vector.broadcast %cst_7 : f32 to vector<8x1xf32>
    %26 = arith.subf %25, %24 : vector<8x1xf32>
    %27 = arith.mulf %23, %26 : vector<8x1xf32>
    %28 = tpu.bitcast %20 : vector<8x128xf32> -> vector<8x128xi32>
    %c-8_i32 = arith.constant -8 : i32
    %29 = vector.broadcast %c-8_i32 : i32 to vector<8x128xi32>
    %30 = arith.andi %28, %29 : vector<8x128xi32>
    %31 = vector.broadcast %7 : vector<1x128xi32> to vector<8x128xi32>
    %32 = arith.ori %30, %31 : vector<8x128xi32>
    %c-2147483648_i32 = arith.constant -2147483648 : i32
    %33 = vector.shape_cast %5 : vector<1x128xi1> to vector<1x128xi1>
    %34 = vector.broadcast %33 : vector<1x128xi1> to vector<8x128xi1>
    %35 = vector.broadcast %c-2147483648_i32 : i32 to vector<8x128xi32>
    %36 = arith.select %34, %32, %35 : vector<8x128xi1>, vector<8x128xi32>
    %cst_8 = arith.constant 0.000000e+00 : f32
    %37 = vector.broadcast %cst_8 : f32 to vector<8x128xf32>
    %c0_9 = arith.constant 0 : index
    %c0_10 = arith.constant 0 : index
    %38 = vector.load %arg3[%c0_9, %c0_10] : memref<8x128xf32, #tpu.memory_space<vmem>>, vector<8x128xf32>
    tpu.vector_store %arg3[%c0_9, %c0_10], %37 {strides = array<i32>} : memref<8x128xf32, #tpu.memory_space<vmem>>, vector<8x128xf32>,
    %cst_11 = arith.constant dense<-2147483648> : vector<8xi32>
    %39 = vector.multi_reduction <maxsi>, %36, %cst_11 [1] : vector<8x128xi32> to vector<8xi32>
    %40 = vector.shape_cast %39 : vector<8xi32> to vector<8x1xi32>
    %c7_i32_12 = arith.constant 7 : i32
    %41 = vector.broadcast %c7_i32_12 : i32 to vector<8x1xi32>
    %42 = arith.andi %40, %41 : vector<8x1xi32>
    %c7_i32_13 = arith.constant 7 : i32
    %43 = vector.broadcast %c7_i32_13 : i32 to vector<8x1xi32>
    %44 = arith.subi %43, %42 : vector<8x1xi32>
    %c-8_i32_14 = arith.constant -8 : i32
    %45 = vector.broadcast %c-8_i32_14 : i32 to vector<8x1xi32>
    %46 = arith.andi %40, %45 : vector<8x1xi32>
    %47 = tpu.bitcast %46 : vector<8x1xi32> -> vector<8x1xf32>
    %48 = vector.broadcast %40 : vector<8x1xi32> to vector<8x128xi32>
    %49 = arith.cmpi eq, %36, %48 : vector<8x128xi32>
    %c-2147483648_i32_15 = arith.constant -2147483648 : i32
    %50 = vector.broadcast %c-2147483648_i32_15 : i32 to vector<8x128xi32>
    %51 = arith.select %49, %50, %36 : vector<8x128xi1>, vector<8x128xi32>
    %52 = arith.sitofp %44 : vector<8x1xi32> to vector<8x1xf32>
    %c0_16 = arith.constant 0 : index
    %c2 = arith.constant 2 : index
    %53 = vector.load %arg3[%c0_16, %c2] : memref<8x128xf32, #tpu.memory_space<vmem>>, vector<8x1xf32>
    tpu.vector_store %arg3[%c0_16, %c2], %52 {strides = array<i32>} : memref<8x128xf32, #tpu.memory_space<vmem>>, vector<8x1xf32>,
    %cst_17 = arith.constant dense<-2147483648> : vector<8xi32>
    %54 = vector.multi_reduction <maxsi>, %51, %cst_17 [1] : vector<8x128xi32> to vector<8xi32>
    %55 = vector.shape_cast %54 : vector<8xi32> to vector<8x1xi32>
    %c7_i32_18 = arith.constant 7 : i32
    %56 = vector.broadcast %c7_i32_18 : i32 to vector<8x1xi32>
    %57 = arith.andi %55, %56 : vector<8x1xi32>
    %c7_i32_19 = arith.constant 7 : i32
    %58 = vector.broadcast %c7_i32_19 : i32 to vector<8x1xi32>
    %59 = arith.subi %58, %57 : vector<8x1xi32>
    %c-8_i32_20 = arith.constant -8 : i32
    %60 = vector.broadcast %c-8_i32_20 : i32 to vector<8x1xi32>
    %61 = arith.andi %55, %60 : vector<8x1xi32>
    %62 = tpu.bitcast %61 : vector<8x1xi32> -> vector<8x1xf32>
    %63 = arith.sitofp %59 : vector<8x1xi32> to vector<8x1xf32>
    %c0_21 = arith.constant 0 : index
    %c3 = arith.constant 3 : index
    %64 = vector.load %arg3[%c0_21, %c3] : memref<8x128xf32, #tpu.memory_space<vmem>>, vector<8x1xf32>
    tpu.vector_store %arg3[%c0_21, %c3], %63 {strides = array<i32>} : memref<8x128xf32, #tpu.memory_space<vmem>>, vector<8x1xf32>,
    %65 = arith.mulf %47, %27 : vector<8x1xf32>
    %66 = arith.mulf %62, %27 : vector<8x1xf32>
    %c0_22 = arith.constant 0 : index
    %c0_23 = arith.constant 0 : index
    %67 = vector.load %arg3[%c0_22, %c0_23] : memref<8x128xf32, #tpu.memory_space<vmem>>, vector<8x1xf32>
    tpu.vector_store %arg3[%c0_22, %c0_23], %65 {strides = array<i32>} : memref<8x128xf32, #tpu.memory_space<vmem>>, vector<8x1xf32>,
    %c0_24 = arith.constant 0 : index
    %c1 = arith.constant 1 : index
    %68 = vector.load %arg3[%c0_24, %c1] : memref<8x128xf32, #tpu.memory_space<vmem>>, vector<8x1xf32>
    tpu.vector_store %arg3[%c0_24, %c1], %66 {strides = array<i32>} : memref<8x128xf32, #tpu.memory_space<vmem>>, vector<8x1xf32>,
    return
  }
  func.func @transform_0(%arg0: i32) -> (i32, i32) {
    %c0_i32 = arith.constant 0 : i32
    %c0_i32_0 = arith.constant 0 : i32
    return %arg0, %c0_i32 : i32, i32
  }
  func.func @transform_1(%arg0: i32) -> (i32, i32) {
    %c0_i32 = arith.constant 0 : i32
    %c0_i32_0 = arith.constant 0 : i32
    %c0_i32_1 = arith.constant 0 : i32
    return %c0_i32, %c0_i32_0 : i32, i32
  }
  func.func @transform_2(%arg0: i32) -> (i32, i32) {
    %c0_i32 = arith.constant 0 : i32
    %c0_i32_0 = arith.constant 0 : i32
    return %arg0, %c0_i32 : i32, i32
  }
}

module attributes {stable_mosaic.version = 11 : i64} {
  func.func @_router_kernel(%arg0: i32, %arg1: memref<8x128xbf16, #tpu.memory_space<vmem>>, %arg2: memref<128x128xbf16, #tpu.memory_space<vmem>>, %arg3: memref<8x128xf32, #tpu.memory_space<vmem>>) attributes {dimension_semantics = [#tpu.dimension_semantics<parallel>], iteration_bounds = array<i64: 2>, scalar_prefetch = 0 : i64, scratch_operands = 0 : i64, tpu.core_type = #tpu.core_type<tc>, window_params = [{transform_indices = @transform_0, window_bounds = array<i64: 8, 128>}, {pipeline_mode = #tpu.pipeline_mode<synchronous>, transform_indices = @transform_1, window_bounds = array<i64: 128, 128>}, {transform_indices = @transform_2, window_bounds = array<i64: 8, 128>}]} {
    %c0 = arith.constant 0 : index
    %c0_0 = arith.constant 0 : index
    %0 = vector.load %arg1[%c0, %c0_0] : memref<8x128xbf16, #tpu.memory_space<vmem>>, vector<8x128xbf16>
    %c0_1 = arith.constant 0 : index
    %c0_2 = arith.constant 0 : index
    %1 = vector.load %arg2[%c0_1, %c0_2] : memref<128x128xbf16, #tpu.memory_space<vmem>>, vector<128x128xbf16>
    %cst = arith.constant dense<0.000000e+00> : vector<8x128xf32>
    %2 = tpu.matmul %0, %1, %cst {dimension_numbers = #tpu.dot_dimension_numbers<[1], [0], [0], [1], [0, 0, 1, 1], [], []>} : vector<8x128xbf16>, vector<128x128xbf16>, vector<8x128xf32> -> vector<8x128xf32>
    %3 = tpu.iota {dimensions = array<i32: 1>} : vector<1x128xi32>
    %c8_i32 = arith.constant 8 : i32
    %4 = vector.broadcast %c8_i32 : i32 to vector<1x128xi32>
    %5 = arith.cmpi slt, %3, %4 : vector<1x128xi32>
    %c7_i32 = arith.constant 7 : i32
    %6 = vector.broadcast %c7_i32 : i32 to vector<1x128xi32>
    %7 = arith.subi %6, %3 : vector<1x128xi32>
    %cst_3 = arith.constant -1.000000e+30 : f32
    %8 = vector.shape_cast %5 : vector<1x128xi1> to vector<1x128xi1>
    %9 = vector.broadcast %8 : vector<1x128xi1> to vector<8x128xi1>
    %10 = vector.broadcast %cst_3 : f32 to vector<8x128xf32>
    %11 = arith.select %9, %2, %10 : vector<8x128xi1>, vector<8x128xf32>
    %cst_4 = arith.constant dense<0xFF800000> : vector<8xf32>
    %12 = vector.multi_reduction <maximumf>, %11, %cst_4 [1] : vector<8x128xf32> to vector<8xf32>
    %13 = vector.shape_cast %12 : vector<8xf32> to vector<8x1xf32>
    %14 = vector.broadcast %13 : vector<8x1xf32> to vector<8x128xf32>
    %15 = arith.subf %2, %14 : vector<8x128xf32>
    %16 = math.exp %15 : vector<8x128xf32>
    %cst_5 = arith.constant 0.000000e+00 : f32
    %17 = vector.shape_cast %5 : vector<1x128xi1> to vector<1x128xi1>
    %18 = vector.broadcast %17 : vector<1x128xi1> to vector<8x128xi1>
    %19 = vector.broadcast %cst_5 : f32 to vector<8x128xf32>
    %20 = arith.select %18, %16, %19 : vector<8x128xi1>, vector<8x128xf32>
    %cst_6 = arith.constant dense<0.000000e+00> : vector<8xf32>
    %21 = vector.multi_reduction <add>, %20, %cst_6 [1] : vector<8x128xf32> to vector<8xf32>
    %22 = vector.shape_cast %21 : vector<8xf32> to vector<8x1xf32>
    %23 = tpu.reciprocal %22 {approx = true} : vector<8x1xf32> -> vector<8x1xf32>
    %24 = arith.mulf %22, %23 : vector<8x1xf32>
    %cst_7 = arith.constant 2.000000e+00 : f32
    %25 = vector.broadcast %cst_7 : f32 to vector<8x1xf32>
    %26 = arith.subf %25, %24 : vector<8x1xf32>
    %27 = arith.mulf %23, %26 : vector<8x1xf32>
    %28 = tpu.bitcast %20 : vector<8x128xf32> -> vector<8x128xi32>
    %c-8_i32 = arith.constant -8 : i32
    %29 = vector.broadcast %c-8_i32 : i32 to vector<8x128xi32>
    %30 = arith.andi %28, %29 : vector<8x128xi32>
    %31 = vector.broadcast %7 : vector<1x128xi32> to vector<8x128xi32>
    %32 = arith.ori %30, %31 : vector<8x128xi32>
    %c-2147483648_i32 = arith.constant -2147483648 : i32
    %33 = vector.shape_cast %5 : vector<1x128xi1> to vector<1x128xi1>
    %34 = vector.broadcast %33 : vector<1x128xi1> to vector<8x128xi1>
    %35 = vector.broadcast %c-2147483648_i32 : i32 to vector<8x128xi32>
    %36 = arith.select %34, %32, %35 : vector<8x128xi1>, vector<8x128xi32>
    %cst_8 = arith.constant 0.000000e+00 : f32
    %37 = vector.broadcast %cst_8 : f32 to vector<8x128xf32>
    %c0_9 = arith.constant 0 : index
    %c0_10 = arith.constant 0 : index
    %38 = vector.load %arg3[%c0_9, %c0_10] : memref<8x128xf32, #tpu.memory_space<vmem>>, vector<8x128xf32>
    tpu.vector_store %arg3[%c0_9, %c0_10], %37 {strides = array<i32>} : memref<8x128xf32, #tpu.memory_space<vmem>>, vector<8x128xf32>,
    %cst_11 = arith.constant dense<-2147483648> : vector<8xi32>
    %39 = vector.multi_reduction <maxsi>, %36, %cst_11 [1] : vector<8x128xi32> to vector<8xi32>
    %40 = vector.shape_cast %39 : vector<8xi32> to vector<8x1xi32>
    %c7_i32_12 = arith.constant 7 : i32
    %41 = vector.broadcast %c7_i32_12 : i32 to vector<8x1xi32>
    %42 = arith.andi %40, %41 : vector<8x1xi32>
    %c7_i32_13 = arith.constant 7 : i32
    %43 = vector.broadcast %c7_i32_13 : i32 to vector<8x1xi32>
    %44 = arith.subi %43, %42 : vector<8x1xi32>
    %c-8_i32_14 = arith.constant -8 : i32
    %45 = vector.broadcast %c-8_i32_14 : i32 to vector<8x1xi32>
    %46 = arith.andi %40, %45 : vector<8x1xi32>
    %47 = tpu.bitcast %46 : vector<8x1xi32> -> vector<8x1xf32>
    %48 = vector.broadcast %40 : vector<8x1xi32> to vector<8x128xi32>
    %49 = arith.cmpi eq, %36, %48 : vector<8x128xi32>
    %c-2147483648_i32_15 = arith.constant -2147483648 : i32
    %50 = vector.broadcast %c-2147483648_i32_15 : i32 to vector<8x128xi32>
    %51 = arith.select %49, %50, %36 : vector<8x128xi1>, vector<8x128xi32>
    %52 = arith.sitofp %44 : vector<8x1xi32> to vector<8x1xf32>
    %c0_16 = arith.constant 0 : index
    %c2 = arith.constant 2 : index
    %53 = vector.load %arg3[%c0_16, %c2] : memref<8x128xf32, #tpu.memory_space<vmem>>, vector<8x1xf32>
    tpu.vector_store %arg3[%c0_16, %c2], %52 {strides = array<i32>} : memref<8x128xf32, #tpu.memory_space<vmem>>, vector<8x1xf32>,
    %cst_17 = arith.constant dense<-2147483648> : vector<8xi32>
    %54 = vector.multi_reduction <maxsi>, %51, %cst_17 [1] : vector<8x128xi32> to vector<8xi32>
    %55 = vector.shape_cast %54 : vector<8xi32> to vector<8x1xi32>
    %c7_i32_18 = arith.constant 7 : i32
    %56 = vector.broadcast %c7_i32_18 : i32 to vector<8x1xi32>
    %57 = arith.andi %55, %56 : vector<8x1xi32>
    %c7_i32_19 = arith.constant 7 : i32
    %58 = vector.broadcast %c7_i32_19 : i32 to vector<8x1xi32>
    %59 = arith.subi %58, %57 : vector<8x1xi32>
    %c-8_i32_20 = arith.constant -8 : i32
    %60 = vector.broadcast %c-8_i32_20 : i32 to vector<8x1xi32>
    %61 = arith.andi %55, %60 : vector<8x1xi32>
    %62 = tpu.bitcast %61 : vector<8x1xi32> -> vector<8x1xf32>
    %63 = arith.sitofp %59 : vector<8x1xi32> to vector<8x1xf32>
    %c0_21 = arith.constant 0 : index
    %c3 = arith.constant 3 : index
    %64 = vector.load %arg3[%c0_21, %c3] : memref<8x128xf32, #tpu.memory_space<vmem>>, vector<8x1xf32>
    tpu.vector_store %arg3[%c0_21, %c3], %63 {strides = array<i32>} : memref<8x128xf32, #tpu.memory_space<vmem>>, vector<8x1xf32>,
    %65 = arith.mulf %47, %27 : vector<8x1xf32>
    %66 = arith.mulf %62, %27 : vector<8x1xf32>
    %c0_22 = arith.constant 0 : index
    %c0_23 = arith.constant 0 : index
    %67 = vector.load %arg3[%c0_22, %c0_23] : memref<8x128xf32, #tpu.memory_space<vmem>>, vector<8x1xf32>
    tpu.vector_store %arg3[%c0_22, %c0_23], %65 {strides = array<i32>} : memref<8x128xf32, #tpu.memory_space<vmem>>, vector<8x1xf32>,
    %c0_24 = arith.constant 0 : index
    %c1 = arith.constant 1 : index
    %68 = vector.load %arg3[%c0_24, %c1] : memref<8x128xf32, #tpu.memory_space<vmem>>, vector<8x1xf32>
    tpu.vector_store %arg3[%c0_24, %c1], %66 {strides = array<i32>} : memref<8x128xf32, #tpu.memory_space<vmem>>, vector<8x1xf32>,
    return
  }
  func.func @transform_0(%arg0: i32) -> (i32, i32) {
    %c0_i32 = arith.constant 0 : i32
    %c0_i32_0 = arith.constant 0 : i32
    return %arg0, %c0_i32 : i32, i32
  }
  func.func @transform_1(%arg0: i32) -> (i32, i32) {
    %c0_i32 = arith.constant 0 : i32
    %c0_i32_0 = arith.constant 0 : i32
    %c0_i32_1 = arith.constant 0 : i32
    return %c0_i32, %c0_i32_0 : i32, i32
  }
  func.func @transform_2(%arg0: i32) -> (i32, i32) {
    %c0_i32 = arith.constant 0 : i32
    %c0_i32_0 = arith.constant 0 : i32
    return %arg0, %c0_i32 : i32, i32
  }
}

</mosaic_0001>

<bundles_post_ra>
// kernel: tpu_custom_call.1
= control target key start
LH: loop header
LB: loop body
LE: loop exit
PB: predicated region body
PF: predicated region fallthrough
CT: control target
= control target key end

     0   :  { %7 = vsyncpa [#allocation3], 0  ;;  %s935_s0 = inlined_call_operand.hbm [shape: bf16[16,128], index: 0, kind: input, shape index: {}]   ;;  %s936_s1 = inlined_call_operand.hbm [shape: bf16[128,128], index: 1, kind: input, shape index: {}]   ;;  %s937_s2 = inlined_call_operand.hbm [shape: f32[16,128], index: 2, kind: output, shape index: {}]  }
   0x1   :  { %9 = vsyncpa [#allocation3 + $0x1], 0 }
   0x2   :  { %10 = vsyncpa [#allocation6], 0 }
   0x3   :  { %11 = vsyncpa [#allocation4], 0 }
   0x4   :  { %13 = vsyncpa [#allocation4 + $0x1], 0  ;;  %s724_s9 = smov 0   ;;  %s726_s10 = smov 0  }
   0x5   :  { %s728_s11 = smov 0   ;;  %s730_s12 = smov 0  }
   0x6 LB: > { %s745_s13 = sadd.s32 4294967295, %s700_s12   ;;  %s448_s14 = sadd.s32 4294967294, %s700_s12   ;;  %s700_s12 = sphi %s730_s12, %s957_s12   ;;  %s696_s11 = sphi %s728_s11, %s956_s11   ;;  %s692_s10 = sphi %s726_s10, %s955_s10   ;;  %s688_s9 = sphi %s724_s9, %s954_s9  }
   0x7   : > { %p39_p0 = scmp.ne.s32.totalorder %s692_s10, %s688_s9  ;;  %p938_p1 = scmp.eq.s32.totalorder %s745_s13, 0 }
   0x8   : > { %p90_p3 = scmp.eq.s32.totalorder %s448_s14, 1  ;;  %p449_p5 = scmp.ge.s32.totalorder %s700_s12, 1 }
   0x9   : > { %p754_p4 = por %p938_p1, %p39_p0  ;;  %p97_p7 = scmp.lt.s32.totalorder %s700_s12, 3 }
   0xa   : > { %p759_p6 = por %p90_p3, %p39_p0  ;;  %s702_s18 = smov [#allocation5]  }
   0xb   : > { %s941_s15 = scalar_select %p754_p4, 1, 0 }
   0xc   : > { %s942_s16 = scalar_select %p759_p6, 1, 0 }
   0xd   : > { %p764_p8 = pnand %p449_p5, %p97_p7  ;;  %s109_s19 = sshll.u32 %s702_s18, 4  ;;  %s768_s19 = int_to_ptr.vmem [resolvable:$true] %s109_s19 }
   0xe   : > { %s780_s21 = sadd.s32 1, %s700_s12   ;;  %s26_s22 = sadd.s32 1, %s696_s11 }
   0xf   : > { %s943_s17 = scalar_select %p764_p8, 1, 0 }
  0x10   : > { %p507_p9 = pneg %p764_p8  ;;  %s23_s23 = ssub.s32 %s700_s12, %s780_s21 }
  0x11   : > { %s572_s26 = scalar_lea.hbm %s936_s1, 1024 }
  0x12   : > { %p775_p11 = pnand %p507_p9, %p938_p1  ;;  %p573_p12 = scmp.ne.s32.totalorder %s936_s1, %s572_s26 }
  0x13   : > { %p579_p5 = scmp.lt.u32.totalorder %s572_s26, %s936_s1 }
  0x14   : > { %p574_p13 = pneg %p775_p11 }
  0x16   : > { %p575_p0 = pnand %p574_p13, %p573_p12 }
  0x18   : > { %p576_p3 = pneg %p575_p0 }
  0x1a   : > { %p581_p7 = pnand %p579_p5, %p576_p3 }
  0x1c   : > { %584 = shalt.err (!%p581_p7)
}
  0x1d   : > { %s585_s3 = scalar_lea.vmem %s768_s19, 1024  ;;  %p593_p2 = scmp.lt.s32.totalorder %s768_s19, %s768_s19 }
  0x1e   : > { %p586_p9 = scmp.ne.s32.totalorder %s768_s19, %s585_s3  ;;  %p594_p6 = scmp.lt.s32.totalorder %s585_s3, %s585_s3 }
  0x20   : > { %p588_p10 = pnand %p586_p9, %p574_p13  ;;  %p595_p4 = por %p594_p6, %p593_p2 }
  0x22   : > { %p589_p1 = pneg %p588_p10 }
  0x24   : > { %p596_p8 = pnand %p595_p4, %p589_p1 }
  0x26   : > { %599 = shalt.err (!%p596_p8)
}
  0x27   : > { %s703_s4 = smov 64   ;;  %s704_s5 = smov 4  }
  0x28   : > { %510 = dma.hbm_to_vmem [thread:$0]  (!%p775_p11), %s936_s1, 1024, %s768_s19, [#allocation6], %s703_s4, %s703_s4, %s704_s5  }
  0x29   : > { %p24_p2 = scmp.eq.s32.totalorder %s23_s23, 0  ;;  %p33_p1 = scmp.ne.s32.totalorder %s696_s11, %s692_s10 }
  0x2a   : > { %p34_p4 = scmp.eq.s32.totalorder %s700_s12, 0  ;;  %p520_p6 = scmp.lt.s32.totalorder %s700_s12, 2 }
  0x2b   : > { %s811_s8 = scalar_select %p24_p2, %s696_s11, %s26_s22  }
  0x2c   : > { %p35_p8 = por %p34_p4, %p33_p1  ;;  %p945_p10 = scmp.eq.s32.totalorder %s745_s13, 1 }
  0x2d   : > { %s123_s18 = sand.u32 1, %s696_s11   ;;  %s453_s24 = sshll.u32 %s700_s12, 6 }
  0x2e   : > { %p815_p12 = por %p945_p10, %p33_p1  ;;  %s452_s25 = sshll.u32 %s123_s18, 2 }
  0x2f   : > { %s824_s27 = scalar_lea.hbm %s935_s0, %s453_s24  ;;  %s127_s19 = scalar_lea.vmem [#allocation2], %s452_s25 }
  0x30   : > { %s134_s22 = sshll.u32 %s127_s19, 4  ;;  %p826_p11 = pnand %p520_p6, %p35_p8  ;;  %s830_s22 = int_to_ptr.vmem [resolvable:$true] %s134_s22 }
  0x31   : > { %s124_s28 = scalar_lea.sflag [#allocation3], %s123_s18  ;;  %s600_s29 = scalar_lea.hbm %s824_s27, 64 }
  0x32   : > { %p601_p13 = scmp.ne.s32.totalorder %s824_s27, %s600_s29  ;;  %p602_p0 = pneg %p826_p11 }
  0x33   : > { %s605_s4 = scalar_lea.hbm %s935_s0, 128  ;;  %p606_p7 = scmp.lt.u32.totalorder %s824_s27, %s935_s0 }
  0x34   : > { %p603_p3 = pnand %p602_p0, %p601_p13  ;;  %p607_p9 = scmp.lt.u32.totalorder %s605_s4, %s600_s29 }
  0x35   : > { %p609_p1 = scmp.lt.u32.totalorder %s600_s29, %s824_s27 }
  0x36   : > { %p604_p5 = pneg %p603_p3  ;;  %p608_p2 = por %p607_p9, %p606_p7 }
  0x38   : > { %p610_p4 = por %p609_p1, %p608_p2 }
  0x3a   : > { %p611_p6 = pnand %p610_p4, %p604_p5 }
  0x3c   : > { %614 = shalt.err (!%p611_p6)
}
  0x3d   : > { %s615_s7 = scalar_lea.vmem %s830_s22, 64  ;;  %s705_s18 = smov [#allocation2]  }
  0x3e   : > { %p616_p8 = scmp.ne.s32.totalorder %s830_s22, %s615_s7  ;;  %s620_s24 = sshll.u32 %s705_s18, 4  ;;  %s621_s24 = int_to_ptr.vmem [resolvable:$false] %s620_s24 }
  0x3f   : > { %s622_s25 = scalar_lea.vmem %s621_s24, 128  ;;  %p623_p3 = scmp.lt.s32.totalorder %s830_s22, %s621_s24 }
  0x40   : > { %p618_p10 = pnand %p616_p8, %p602_p0  ;;  %p624_p7 = scmp.lt.s32.totalorder %s622_s25, %s615_s7 }
  0x42   : > { %p619_p13 = pneg %p618_p10  ;;  %p625_p9 = por %p624_p7, %p623_p3 }
  0x44   : > { %p626_p2 = pnand %p625_p9, %p619_p13 }
  0x46   : > { %629 = shalt.err (!%p626_p2)
}
  0x47   : > { %514 = dma.hbm_to_vmem [thread:$0]  (!%p826_p11), %s824_s27, 64, %s830_s22, %s124_s28  }
  0x48   : > { %p948_p5 = scmp.ne.s32.totalorder %s943_s17, 0 }
  0x49   : > { %s860_s20 = sand.u32 (!%p948_p5), 1, %s692_s10   ;;  %p949_p0 = scmp.ne.s32.totalorder (!%p948_p5), %s941_s15, 0 }
  0x4a   : > { %143 = sbr.rel (%p948_p5) target bundleno = 1106 (0x452), region = 28  ;;  %s455_s26 = sshll.u32 (!%p948_p5), %s860_s20, 2 }
  0x4b   : > { %s146_s19 = scalar_lea.sflag (!%p948_p5), [#allocation3], %s860_s20  ;;  %s864_s29 = scalar_lea.vmem (!%p948_p5), [#allocation2], %s455_s26 }
  0x51   : > { %675 = dma.done.wait (%p949_p0), %s146_s19, 64  }
  0x52   : > { %677 = vsyncadd (%p949_p0), %s146_s19, 4294967232  ;;  %p950_p11 = scmp.eq.s32.totalorder %s745_s13, 0 }
  0x54   : > { %679 = dma.done.wait (%p950_p11), [#allocation6], 1024   ;;  %p951_p1 = pmov %p950_p11 }
  0x55   : > { %v706_v0 = vmov 0.0   ;;  %vm707_vm0 = vmmov 0   ;;  %v560_v1 = vld [vmem:[#allocation5] sm:$0xff]   ;;  %v561_v2 = vld [vmem:[#allocation5 + $0x8] sm:$0xff]   ;;  %v562_v3 = vld [vmem:[#allocation5 + $0x10] sm:$0xff]   ;;  %v280_v10 = vlaneseq  ;;  %s457_s15 = sshll.u32 %s860_s20, 3 }
  0x56   : > { %681 = vsyncadd (%p951_p1), [#allocation6], 4294966272  ;;  %479 = vmatprep.subr.bf16.mxu0 %v706_v0  ;;  %495 = vmatprep.mubr.msk.bf16.mxu0 %vm707_vm0, %v706_v0  ;;  %v563_v4 = vld [vmem:[#allocation5 + $0x18] sm:$0xff]   ;;  %v564_v5 = vld [vmem:[#allocation5 + $0x20] sm:$0xff]   ;;  %s879_s17 = scalar_lea.vmem [#allocation7], %s457_s15  ;;  %vm325_vm4 = vcmask 23568  }
  0x57   : > { %480 = vmatpush3.bf16.msra.mxu0 %v560_v1  ;;  %v565_v6 = vld [vmem:[#allocation5 + $0x28] sm:$0xff]   ;;  %v566_v7 = vld [vmem:[#allocation5 + $0x30] sm:$0xff]   ;;  %v567_v8 = vld [vmem:[#allocation5 + $0x38] sm:$0xff]   ;;  %v281_v11 = vand.u32 127, %v280_v10  ;;  %303 = vst [vmem:[%s879_s17] sm:$0xff] %v706_v0  ;;  %vm346_vm6 = vcmask 31768   ;;  %s467_s27 = sshll.u32 %s745_s13, 7 }
  0x58   : > { %481 = vmatprep.subr.bf16.mxu0 %v706_v0  ;;  %v175_v9 = vld [vmem:[%s864_s29] sm:$0xf]  ;;  %s368_s22 = sshll.u32 %s879_s17, 4  ;;  %vm350_vm7 = vcmask 7168   ;;  %vm352_vm8 = vcmask 15368   ;;  %s889_s30 = scalar_lea.hbm %s937_s2, %s467_s27  ;;  %s891_s22 = int_to_ptr.vmem [resolvable:$true] %s368_s22 }
  0x59   : > { %vm282_vm1 = vcmp.lt.s32.totalorder %v281_v11, 8  ;;  %v283_v21 = vsub.s32 7, %v281_v11  ;;  %s355_s13 = scalar_lea.sflag [#allocation4], %s860_s20  ;;  %s630_s3 = scalar_lea.vmem %s891_s22, 128 }
  0x5a   : > { %p631_p4 = scmp.ne.s32.totalorder %s891_s22, %s630_s3  ;;  %s708_s4 = smov [#allocation7]  }
  0x5b   : > { %482 = vmatpush3.bf16.msra.mxu0 %v561_v2  ;;  %s634_s5 = sshll.u32 %s708_s4, 4  ;;  %s635_s5 = int_to_ptr.vmem [resolvable:$false] %s634_s5 }
  0x5c   : > { %483 = vmatprep.subr.bf16.mxu0 %v706_v0  ;;  %p632_p6 = pnand %p631_p4, %p815_p12  ;;  %s636_s6 = scalar_lea.vmem %s635_s5, 256 }
  0x5d   : > { %p637_p10 = scmp.lt.s32.totalorder %s891_s22, %s635_s5  ;;  %p638_p13 = scmp.lt.s32.totalorder %s636_s6, %s630_s3 }
  0x5e   : > { %p633_p8 = pneg %p632_p6 }
  0x5f   : > { %484 = vmatpush3.bf16.msra.mxu0 %v562_v3  ;;  %p639_p3 = por %p638_p13, %p637_p10 }
  0x60   : > { %485 = vmatprep.subr.bf16.mxu0 %v706_v0 }
  0x61   : > { %p640_p7 = pnand %p639_p3, %p633_p8 }
  0x63   : > { %486 = vmatpush3.bf16.msra.mxu0 %v563_v4 }
  0x64   : > { %487 = vmatprep.subr.bf16.mxu0 %v706_v0 }
  0x67   : > { %488 = vmatpush3.bf16.msra.mxu0 %v564_v5 }
  0x68   : > { %489 = vmatprep.subr.bf16.mxu0 %v706_v0 }
  0x6b   : > { %490 = vmatpush3.bf16.msra.mxu0 %v565_v6 }
  0x6c   : > { %491 = vmatprep.subr.bf16.mxu0 %v706_v0 }
  0x6f   : > { %492 = vmatpush3.bf16.msra.mxu0 %v566_v7 }
  0x70   : > { %493 = vmatprep.subr.bf16.mxu0 %v706_v0 }
  0x73   : > { %494 = vmatpush3.bf16.msra.mxu0 %v567_v8 }
  0x76   : > { %496 = vmatmul.mubr.bf16.vlgmr.msra.gmra.mrb[0].mxu0 %v175_v9 }
 0x149   : > { %v274_v12 = vpop.f32.mrb[0].mxu0 }
 0x14a   : > { %v497_v13 = vpop.f32.mrb[1].mxu0  ;;  %v286_v14 = vsel %vm282_vm1, %v274_v12, -1e+30 }
 0x14b   : > { %287 = vmax.xlane.f32.xlu0 %v286_v14  ;;  %v277_v15 = vpop.f32.mrb[2].mxu0 }
 0x14c   : > { %v498_v16 = vpop.f32.mrb[3].mxu0 }
 0x1d8   : > { %v288_v17 = vpop.xlane.xlu0 %287 }
 0x1d9   : > { %v289_v18 = vsub.f32 %v274_v12, %v288_v17 }
 0x1db   : > { %v290_v19 = vmul.f32 1.442695, %v289_v18 }
 0x1dd   : > { %568 = vpow2.f32 %v290_v19 }
 0x1e7   : > { %v569_v20 = vpop.eup %568 }
 0x1e8   : > { %v292_v22 = vsel %vm282_vm1, %v569_v20, 0.0 }
 0x1e9   : > { %v300_v23 = vand.u32 4294967288, %v292_v22 }
 0x1eb   : > { %v301_v24 = vor.u32 %v300_v23, %v283_v21 }
 0x1ed   : > { %v302_v25 = vsel %vm282_vm1, %v301_v24, 2147483648 }
 0x1ee   : > { %v305_v26 = vshra.s32 %v302_v25, 16  ;;  %v304_v28 = vand.u32 65535, %v302_v25 }
 0x1f0   : > { %v307_v27 = vcvt.s32.f32 %v305_v26  ;;  %v306_v30 = vcvt.s32.f32 %v304_v28 }
 0x1f2   : > { %308 = vmax.xlane.f32.xlu0 %v307_v27 }
 0x1f6   : > { %293 = vadd.xlane.f32.xlu0 %v292_v22 }
 0x27f   : > { %v309_v29 = vpop.xlane.xlu0 %308 }
 0x280   : > { %vm310_vm2 = vcmp.eq.f32.partialorder %v307_v27, %v309_v29  ;;  %v315_v32 = vcvt.f32.s32 %v309_v29 }
 0x281   : > { %v311_v31 = vsel %vm310_vm2, %v306_v30, -inf }
 0x282   : > { %312 = vmax.xlane.f32.xlu1 %v311_v31  ;;  %v316_v34 = vshll.u32 %v315_v32, 16 }
 0x283   : > { %v294_v47 = vpop.xlane.xlu0 %293 }
 0x284   : > { %570 = vrcp.f32 %v294_v47 }
 0x28e   : > { %v571_v48 = vpop.eup %570 }
 0x28f   : > { %v296_v50 = vmul.f32 %v571_v48, %v294_v47 }
 0x291   : > { %v297_v55 = vsub.f32 2.0, %v296_v50 }
 0x293   : > { %v298_v60 = vmul.f32 %v571_v48, %v297_v55 }
 0x30f   : > { %v313_v33 = vpop.xlane.xlu1 %312 }
 0x310   : > { %v314_v35 = vcvt.f32.s32 %v313_v33 }
 0x312   : > { %v317_v36 = vadd.s32 %v316_v34, %v314_v35 }
 0x314   : > { %v318_v37 = vand.u32 7, %v317_v36  ;;  %vm322_vm3 = vcmp.eq.s32.totalorder %v302_v25, %v317_v36  ;;  %v320_v57 = vand.u32 4294967288, %v317_v36 }
 0x315   : > { %v323_v38 = vsel %vm322_vm3, 2147483648, %v302_v25 }
 0x316   : > { %v319_v39 = vsub.s32 7, %v318_v37  ;;  %v328_v40 = vshra.s32 %v323_v38, 16  ;;  %v327_v43 = vand.u32 65535, %v323_v38  ;;  %v348_v62 = vmul.f32 %v320_v57, %v298_v60 }
 0x318   : > { %v324_v41 = vcvt.s32.f32 %v319_v39  ;;  %v330_v42 = vcvt.s32.f32 %v328_v40  ;;  %v329_v45 = vcvt.s32.f32 %v327_v43 }
 0x31a   : > { %331 = vmax.xlane.f32.xlu1 %v330_v42  ;;  %326 = vst.msk [vmem:[%s879_s17] sm:$0xff] %vm325_vm4, %v324_v41 }
 0x3a7   : > { %v332_v44 = vpop.xlane.xlu1 %331 }
 0x3a8   : > { %vm333_vm5 = vcmp.eq.f32.partialorder %v330_v42, %v332_v44  ;;  %v338_v49 = vcvt.f32.s32 %v332_v44 }
 0x3a9   : > { %v334_v46 = vsel %vm333_vm5, %v329_v45, -inf }
 0x3aa   : > { %335 = vmax.xlane.f32.xlu1 %v334_v46  ;;  %v339_v52 = vshll.u32 %v338_v49, 16 }
 0x437   : > { %v336_v51 = vpop.xlane.xlu1 %335 }
 0x438   : > { %v337_v53 = vcvt.f32.s32 %v336_v51 }
 0x43a   : > { %v340_v54 = vadd.s32 %v339_v52, %v337_v53 }
 0x43c   : > { %v341_v56 = vand.u32 7, %v340_v54  ;;  %v343_v59 = vand.u32 4294967288, %v340_v54 }
 0x43e   : > { %v342_v58 = vsub.s32 7, %v341_v56  ;;  %v349_v63 = vmul.f32 %v343_v59, %v298_v60 }
 0x440   : > { %v345_v61 = vcvt.s32.f32 %v342_v58 }
 0x442   : > { %347 = vst.msk [vmem:[%s879_s17] sm:$0xff] %vm346_vm6, %v345_v61 }
 0x443   : > { %351 = vst.msk [vmem:[%s879_s17] sm:$0xff] %vm350_vm7, %v348_v62 }
 0x444   : > { %353 = vst.msk [vmem:[%s879_s17] sm:$0xff] %vm352_vm8, %v349_v63 }
 0x445   : > { %643 = shalt.err (!%p640_p7)
}
 0x446   : > { %s644_s7 = scalar_lea.hbm %s889_s30, 128  ;;  %s648_s25 = scalar_lea.hbm %s937_s2, 256 }
 0x447   : > { %p645_p9 = scmp.ne.s32.totalorder %s889_s30, %s644_s7  ;;  %p649_p0 = scmp.lt.u32.totalorder %s889_s30, %s937_s2 }
 0x448   : > { %p650_p11 = scmp.lt.u32.totalorder %s648_s25, %s644_s7  ;;  %p652_p4 = scmp.lt.u32.totalorder %s644_s7, %s889_s30 }
 0x449   : > { %p646_p2 = pnand %p645_p9, %p815_p12 }
 0x44a   : > { %p651_p1 = por %p650_p11, %p649_p0 }
 0x44b   : > { %p647_p5 = pneg %p646_p2 }
 0x44c   : > { %p653_p6 = por %p652_p4, %p651_p1 }
 0x44e   : > { %p654_p8 = pnand %p653_p6, %p647_p5 }
 0x450   : > { %657 = shalt.err (!%p654_p8)
}
 0x451   : > { %505 = dma.vmem_to_hbm [thread:$0]  (%p815_p12), %s891_s22, 128, %s889_s30, %s355_s13  }
 0x452 PF: > { %s380_s19 = sand.u32 1, %s688_s9   ;;  %p952_p10 = scmp.ne.s32.totalorder %s942_s16, 0 }
 0x453   : > { %p953_p13 = scmp.ge.s32.totalorder %s700_s12, 2  ;;  %s381_s29 = scalar_lea.sflag [#allocation4], %s380_s19 }
 0x455   : > { %p516_p3 = pnand %p953_p13, %p952_p10 }
 0x457   : > { %683 = dma.done.wait (!%p516_p3), %s381_s29, 128  }
 0x458   : > { %685 = vsyncadd (!%p516_p3), %s381_s29, 4294967168  ;;  %p16_p7 = scmp.ge.s32.totalorder %s780_s21, 4   ;;  %s954_s9 = smov %s692_s10 }
 0x459   : > { %s955_s10 = smov %s696_s11  ;;  %s956_s11 = smov %s811_s8 }
 0x45a   : > { %s957_s12 = smov %s780_s21  ;;  %18 = sbr.rel (!%p16_p7) target bundleno = 6 (0x6), region = 77 }
 0x461   :  { %386 = vsyncpa [#allocation3], 1 }
 0x462   :  { %388 = vsyncpa [#allocation3 + $0x1], 1 }
 0x463   :  { %389 = vsyncpa [#allocation6], 1 }
 0x464   :  { %390 = vsyncpa [#allocation4], 1 }
 0x465   :  { %392 = vsyncpa [#allocation4 + $0x1], 1 }

// kernel: tpu_custom_call.1
= control target key start
LH: loop header
LB: loop body
LE: loop exit
PB: predicated region body
PF: predicated region fallthrough
CT: control target
= control target key end

     0   :  { %7 = vsyncpa [#allocation3], 0  ;;  %s935_s0 = inlined_call_operand.hbm [shape: bf16[16,128], index: 0, kind: input, shape index: {}]   ;;  %s936_s1 = inlined_call_operand.hbm [shape: bf16[128,128], index: 1, kind: input, shape index: {}]   ;;  %s937_s2 = inlined_call_operand.hbm [shape: f32[16,128], index: 2, kind: output, shape index: {}]  }
   0x1   :  { %9 = vsyncpa [#allocation3 + $0x1], 0 }
   0x2   :  { %10 = vsyncpa [#allocation6], 0 }
   0x3   :  { %11 = vsyncpa [#allocation4], 0 }
   0x4   :  { %13 = vsyncpa [#allocation4 + $0x1], 0  ;;  %s724_s9 = smov 0   ;;  %s726_s10 = smov 0  }
   0x5   :  { %s728_s11 = smov 0   ;;  %s730_s12 = smov 0  }
   0x6 LB: > { %s745_s13 = sadd.s32 4294967295, %s700_s12   ;;  %s448_s14 = sadd.s32 4294967294, %s700_s12   ;;  %s700_s12 = sphi %s730_s12, %s957_s12   ;;  %s696_s11 = sphi %s728_s11, %s956_s11   ;;  %s692_s10 = sphi %s726_s10, %s955_s10   ;;  %s688_s9 = sphi %s724_s9, %s954_s9  }
   0x7   : > { %p39_p0 = scmp.ne.s32.totalorder %s692_s10, %s688_s9  ;;  %p938_p1 = scmp.eq.s32.totalorder %s745_s13, 0 }
   0x8   : > { %p90_p3 = scmp.eq.s32.totalorder %s448_s14, 1  ;;  %p449_p5 = scmp.ge.s32.totalorder %s700_s12, 1 }
   0x9   : > { %p754_p4 = por %p938_p1, %p39_p0  ;;  %p97_p7 = scmp.lt.s32.totalorder %s700_s12, 3 }
   0xa   : > { %p759_p6 = por %p90_p3, %p39_p0  ;;  %s702_s18 = smov [#allocation5]  }
   0xb   : > { %s941_s15 = scalar_select %p754_p4, 1, 0 }
   0xc   : > { %s942_s16 = scalar_select %p759_p6, 1, 0 }
   0xd   : > { %p764_p8 = pnand %p449_p5, %p97_p7  ;;  %s109_s19 = sshll.u32 %s702_s18, 4  ;;  %s768_s19 = int_to_ptr.vmem [resolvable:$true] %s109_s19 }
   0xe   : > { %s780_s21 = sadd.s32 1, %s700_s12   ;;  %s26_s22 = sadd.s32 1, %s696_s11 }
   0xf   : > { %s943_s17 = scalar_select %p764_p8, 1, 0 }
  0x10   : > { %p507_p9 = pneg %p764_p8  ;;  %s23_s23 = ssub.s32 %s700_s12, %s780_s21 }
  0x11   : > { %s572_s26 = scalar_lea.hbm %s936_s1, 1024 }
  0x12   : > { %p775_p11 = pnand %p507_p9, %p938_p1  ;;  %p573_p12 = scmp.ne.s32.totalorder %s936_s1, %s572_s26 }
  0x13   : > { %p579_p5 = scmp.lt.u32.totalorder %s572_s26, %s936_s1 }
  0x14   : > { %p574_p13 = pneg %p775_p11 }
  0x16   : > { %p575_p0 = pnand %p574_p13, %p573_p12 }
  0x18   : > { %p576_p3 = pneg %p575_p0 }
  0x1a   : > { %p581_p7 = pnand %p579_p5, %p576_p3 }
  0x1c   : > { %584 = shalt.err (!%p581_p7)
}
  0x1d   : > { %s585_s3 = scalar_lea.vmem %s768_s19, 1024  ;;  %p593_p2 = scmp.lt.s32.totalorder %s768_s19, %s768_s19 }
  0x1e   : > { %p586_p9 = scmp.ne.s32.totalorder %s768_s19, %s585_s3  ;;  %p594_p6 = scmp.lt.s32.totalorder %s585_s3, %s585_s3 }
  0x20   : > { %p588_p10 = pnand %p586_p9, %p574_p13  ;;  %p595_p4 = por %p594_p6, %p593_p2 }
  0x22   : > { %p589_p1 = pneg %p588_p10 }
  0x24   : > { %p596_p8 = pnand %p595_p4, %p589_p1 }
  0x26   : > { %599 = shalt.err (!%p596_p8)
}
  0x27   : > { %s703_s4 = smov 64   ;;  %s704_s5 = smov 4  }
  0x28   : > { %510 = dma.hbm_to_vmem [thread:$0]  (!%p775_p11), %s936_s1, 1024, %s768_s19, [#allocation6], %s703_s4, %s703_s4, %s704_s5  }
  0x29   : > { %p24_p2 = scmp.eq.s32.totalorder %s23_s23, 0  ;;  %p33_p1 = scmp.ne.s32.totalorder %s696_s11, %s692_s10 }
  0x2a   : > { %p34_p4 = scmp.eq.s32.totalorder %s700_s12, 0  ;;  %p520_p6 = scmp.lt.s32.totalorder %s700_s12, 2 }
  0x2b   : > { %s811_s8 = scalar_select %p24_p2, %s696_s11, %s26_s22  }
  0x2c   : > { %p35_p8 = por %p34_p4, %p33_p1  ;;  %p945_p10 = scmp.eq.s32.totalorder %s745_s13, 1 }
  0x2d   : > { %s123_s18 = sand.u32 1, %s696_s11   ;;  %s453_s24 = sshll.u32 %s700_s12, 6 }
  0x2e   : > { %p815_p12 = por %p945_p10, %p33_p1  ;;  %s452_s25 = sshll.u32 %s123_s18, 2 }
  0x2f   : > { %s824_s27 = scalar_lea.hbm %s935_s0, %s453_s24  ;;  %s127_s19 = scalar_lea.vmem [#allocation2], %s452_s25 }
  0x30   : > { %s134_s22 = sshll.u32 %s127_s19, 4  ;;  %p826_p11 = pnand %p520_p6, %p35_p8  ;;  %s830_s22 = int_to_ptr.vmem [resolvable:$true] %s134_s22 }
  0x31   : > { %s124_s28 = scalar_lea.sflag [#allocation3], %s123_s18  ;;  %s600_s29 = scalar_lea.hbm %s824_s27, 64 }
  0x32   : > { %p601_p13 = scmp.ne.s32.totalorder %s824_s27, %s600_s29  ;;  %p602_p0 = pneg %p826_p11 }
  0x33   : > { %s605_s4 = scalar_lea.hbm %s935_s0, 128  ;;  %p606_p7 = scmp.lt.u32.totalorder %s824_s27, %s935_s0 }
  0x34   : > { %p603_p3 = pnand %p602_p0, %p601_p13  ;;  %p607_p9 = scmp.lt.u32.totalorder %s605_s4, %s600_s29 }
  0x35   : > { %p609_p1 = scmp.lt.u32.totalorder %s600_s29, %s824_s27 }
  0x36   : > { %p604_p5 = pneg %p603_p3  ;;  %p608_p2 = por %p607_p9, %p606_p7 }
  0x38   : > { %p610_p4 = por %p609_p1, %p608_p2 }
  0x3a   : > { %p611_p6 = pnand %p610_p4, %p604_p5 }
  0x3c   : > { %614 = shalt.err (!%p611_p6)
}
  0x3d   : > { %s615_s7 = scalar_lea.vmem %s830_s22, 64  ;;  %s705_s18 = smov [#allocation2]  }
  0x3e   : > { %p616_p8 = scmp.ne.s32.totalorder %s830_s22, %s615_s7  ;;  %s620_s24 = sshll.u32 %s705_s18, 4  ;;  %s621_s24 = int_to_ptr.vmem [resolvable:$false] %s620_s24 }
  0x3f   : > { %s622_s25 = scalar_lea.vmem %s621_s24, 128  ;;  %p623_p3 = scmp.lt.s32.totalorder %s830_s22, %s621_s24 }
  0x40   : > { %p618_p10 = pnand %p616_p8, %p602_p0  ;;  %p624_p7 = scmp.lt.s32.totalorder %s622_s25, %s615_s7 }
  0x42   : > { %p619_p13 = pneg %p618_p10  ;;  %p625_p9 = por %p624_p7, %p623_p3 }
  0x44   : > { %p626_p2 = pnand %p625_p9, %p619_p13 }
  0x46   : > { %629 = shalt.err (!%p626_p2)
}
  0x47   : > { %514 = dma.hbm_to_vmem [thread:$0]  (!%p826_p11), %s824_s27, 64, %s830_s22, %s124_s28  }
  0x48   : > { %p948_p5 = scmp.ne.s32.totalorder %s943_s17, 0 }
  0x49   : > { %s860_s20 = sand.u32 (!%p948_p5), 1, %s692_s10   ;;  %p949_p0 = scmp.ne.s32.totalorder (!%p948_p5), %s941_s15, 0 }
  0x4a   : > { %143 = sbr.rel (%p948_p5) target bundleno = 1106 (0x452), region = 28  ;;  %s455_s26 = sshll.u32 (!%p948_p5), %s860_s20, 2 }
  0x4b   : > { %s146_s19 = scalar_lea.sflag (!%p948_p5), [#allocation3], %s860_s20  ;;  %s864_s29 = scalar_lea.vmem (!%p948_p5), [#allocation2], %s455_s26 }
  0x51   : > { %675 = dma.done.wait (%p949_p0), %s146_s19, 64  }
  0x52   : > { %677 = vsyncadd (%p949_p0), %s146_s19, 4294967232  ;;  %p950_p11 = scmp.eq.s32.totalorder %s745_s13, 0 }
  0x54   : > { %679 = dma.done.wait (%p950_p11), [#allocation6], 1024   ;;  %p951_p1 = pmov %p950_p11 }
  0x55   : > { %v706_v0 = vmov 0.0   ;;  %vm707_vm0 = vmmov 0   ;;  %v560_v1 = vld [vmem:[#allocation5] sm:$0xff]   ;;  %v561_v2 = vld [vmem:[#allocation5 + $0x8] sm:$0xff]   ;;  %v562_v3 = vld [vmem:[#allocation5 + $0x10] sm:$0xff]   ;;  %v280_v10 = vlaneseq  ;;  %s457_s15 = sshll.u32 %s860_s20, 3 }
  0x56   : > { %681 = vsyncadd (%p951_p1), [#allocation6], 4294966272  ;;  %479 = vmatprep.subr.bf16.mxu0 %v706_v0  ;;  %495 = vmatprep.mubr.msk.bf16.mxu0 %vm707_vm0, %v706_v0  ;;  %v563_v4 = vld [vmem:[#allocation5 + $0x18] sm:$0xff]   ;;  %v564_v5 = vld [vmem:[#allocation5 + $0x20] sm:$0xff]   ;;  %s879_s17 = scalar_lea.vmem [#allocation7], %s457_s15  ;;  %vm325_vm4 = vcmask 23568  }
  0x57   : > { %480 = vmatpush3.bf16.msra.mxu0 %v560_v1  ;;  %v565_v6 = vld [vmem:[#allocation5 + $0x28] sm:$0xff]   ;;  %v566_v7 = vld [vmem:[#allocation5 + $0x30] sm:$0xff]   ;;  %v567_v8 = vld [vmem:[#allocation5 + $0x38] sm:$0xff]   ;;  %v281_v11 = vand.u32 127, %v280_v10  ;;  %303 = vst [vmem:[%s879_s17] sm:$0xff] %v706_v0  ;;  %vm346_vm6 = vcmask 31768   ;;  %s467_s27 = sshll.u32 %s745_s13, 7 }
  0x58   : > { %481 = vmatprep.subr.bf16.mxu0 %v706_v0  ;;  %v175_v9 = vld [vmem:[%s864_s29] sm:$0xf]  ;;  %s368_s22 = sshll.u32 %s879_s17, 4  ;;  %vm350_vm7 = vcmask 7168   ;;  %vm352_vm8 = vcmask 15368   ;;  %s889_s30 = scalar_lea.hbm %s937_s2, %s467_s27  ;;  %s891_s22 = int_to_ptr.vmem [resolvable:$true] %s368_s22 }
  0x59   : > { %vm282_vm1 = vcmp.lt.s32.totalorder %v281_v11, 8  ;;  %v283_v21 = vsub.s32 7, %v281_v11  ;;  %s355_s13 = scalar_lea.sflag [#allocation4], %s860_s20  ;;  %s630_s3 = scalar_lea.vmem %s891_s22, 128 }
  0x5a   : > { %p631_p4 = scmp.ne.s32.totalorder %s891_s22, %s630_s3  ;;  %s708_s4 = smov [#allocation7]  }
  0x5b   : > { %482 = vmatpush3.bf16.msra.mxu0 %v561_v2  ;;  %s634_s5 = sshll.u32 %s708_s4, 4  ;;  %s635_s5 = int_to_ptr.vmem [resolvable:$false] %s634_s5 }
  0x5c   : > { %483 = vmatprep.subr.bf16.mxu0 %v706_v0  ;;  %p632_p6 = pnand %p631_p4, %p815_p12  ;;  %s636_s6 = scalar_lea.vmem %s635_s5, 256 }
  0x5d   : > { %p637_p10 = scmp.lt.s32.totalorder %s891_s22, %s635_s5  ;;  %p638_p13 = scmp.lt.s32.totalorder %s636_s6, %s630_s3 }
  0x5e   : > { %p633_p8 = pneg %p632_p6 }
  0x5f   : > { %484 = vmatpush3.bf16.msra.mxu0 %v562_v3  ;;  %p639_p3 = por %p638_p13, %p637_p10 }
  0x60   : > { %485 = vmatprep.subr.bf16.mxu0 %v706_v0 }
  0x61   : > { %p640_p7 = pnand %p639_p3, %p633_p8 }
  0x63   : > { %486 = vmatpush3.bf16.msra.mxu0 %v563_v4 }
  0x64   : > { %487 = vmatprep.subr.bf16.mxu0 %v706_v0 }
  0x67   : > { %488 = vmatpush3.bf16.msra.mxu0 %v564_v5 }
  0x68   : > { %489 = vmatprep.subr.bf16.mxu0 %v706_v0 }
  0x6b   : > { %490 = vmatpush3.bf16.msra.mxu0 %v565_v6 }
  0x6c   : > { %491 = vmatprep.subr.bf16.mxu0 %v706_v0 }
  0x6f   : > { %492 = vmatpush3.bf16.msra.mxu0 %v566_v7 }
  0x70   : > { %493 = vmatprep.subr.bf16.mxu0 %v706_v0 }
  0x73   : > { %494 = vmatpush3.bf16.msra.mxu0 %v567_v8 }
  0x76   : > { %496 = vmatmul.mubr.bf16.vlgmr.msra.gmra.mrb[0].mxu0 %v175_v9 }
 0x149   : > { %v274_v12 = vpop.f32.mrb[0].mxu0 }
 0x14a   : > { %v497_v13 = vpop.f32.mrb[1].mxu0  ;;  %v286_v14 = vsel %vm282_vm1, %v274_v12, -1e+30 }
 0x14b   : > { %287 = vmax.xlane.f32.xlu0 %v286_v14  ;;  %v277_v15 = vpop.f32.mrb[2].mxu0 }
 0x14c   : > { %v498_v16 = vpop.f32.mrb[3].mxu0 }
 0x1d8   : > { %v288_v17 = vpop.xlane.xlu0 %287 }
 0x1d9   : > { %v289_v18 = vsub.f32 %v274_v12, %v288_v17 }
 0x1db   : > { %v290_v19 = vmul.f32 1.442695, %v289_v18 }
 0x1dd   : > { %568 = vpow2.f32 %v290_v19 }
 0x1e7   : > { %v569_v20 = vpop.eup %568 }
 0x1e8   : > { %v292_v22 = vsel %vm282_vm1, %v569_v20, 0.0 }
 0x1e9   : > { %v300_v23 = vand.u32 4294967288, %v292_v22 }
 0x1eb   : > { %v301_v24 = vor.u32 %v300_v23, %v283_v21 }
 0x1ed   : > { %v302_v25 = vsel %vm282_vm1, %v301_v24, 2147483648 }
 0x1ee   : > { %v305_v26 = vshra.s32 %v302_v25, 16  ;;  %v304_v28 = vand.u32 65535, %v302_v25 }
 0x1f0   : > { %v307_v27 = vcvt.s32.f32 %v305_v26  ;;  %v306_v30 = vcvt.s32.f32 %v304_v28 }
 0x1f2   : > { %308 = vmax.xlane.f32.xlu0 %v307_v27 }
 0x1f6   : > { %293 = vadd.xlane.f32.xlu0 %v292_v22 }
 0x27f   : > { %v309_v29 = vpop.xlane.xlu0 %308 }
 0x280   : > { %vm310_vm2 = vcmp.eq.f32.partialorder %v307_v27, %v309_v29  ;;  %v315_v32 = vcvt.f32.s32 %v309_v29 }
 0x281   : > { %v311_v31 = vsel %vm310_vm2, %v306_v30, -inf }
 0x282   : > { %312 = vmax.xlane.f32.xlu1 %v311_v31  ;;  %v316_v34 = vshll.u32 %v315_v32, 16 }
 0x283   : > { %v294_v47 = vpop.xlane.xlu0 %293 }
 0x284   : > { %570 = vrcp.f32 %v294_v47 }
 0x28e   : > { %v571_v48 = vpop.eup %570 }
 0x28f   : > { %v296_v50 = vmul.f32 %v571_v48, %v294_v47 }
 0x291   : > { %v297_v55 = vsub.f32 2.0, %v296_v50 }
 0x293   : > { %v298_v60 = vmul.f32 %v571_v48, %v297_v55 }
 0x30f   : > { %v313_v33 = vpop.xlane.xlu1 %312 }
 0x310   : > { %v314_v35 = vcvt.f32.s32 %v313_v33 }
 0x312   : > { %v317_v36 = vadd.s32 %v316_v34, %v314_v35 }
 0x314   : > { %v318_v37 = vand.u32 7, %v317_v36  ;;  %vm322_vm3 = vcmp.eq.s32.totalorder %v302_v25, %v317_v36  ;;  %v320_v57 = vand.u32 4294967288, %v317_v36 }
 0x315   : > { %v323_v38 = vsel %vm322_vm3, 2147483648, %v302_v25 }
 0x316   : > { %v319_v39 = vsub.s32 7, %v318_v37  ;;  %v328_v40 = vshra.s32 %v323_v38, 16  ;;  %v327_v43 = vand.u32 65535, %v323_v38  ;;  %v348_v62 = vmul.f32 %v320_v57, %v298_v60 }
 0x318   : > { %v324_v41 = vcvt.s32.f32 %v319_v39  ;;  %v330_v42 = vcvt.s32.f32 %v328_v40  ;;  %v329_v45 = vcvt.s32.f32 %v327_v43 }
 0x31a   : > { %331 = vmax.xlane.f32.xlu1 %v330_v42  ;;  %326 = vst.msk [vmem:[%s879_s17] sm:$0xff] %vm325_vm4, %v324_v41 }
 0x3a7   : > { %v332_v44 = vpop.xlane.xlu1 %331 }
 0x3a8   : > { %vm333_vm5 = vcmp.eq.f32.partialorder %v330_v42, %v332_v44  ;;  %v338_v49 = vcvt.f32.s32 %v332_v44 }
 0x3a9   : > { %v334_v46 = vsel %vm333_vm5, %v329_v45, -inf }
 0x3aa   : > { %335 = vmax.xlane.f32.xlu1 %v334_v46  ;;  %v339_v52 = vshll.u32 %v338_v49, 16 }
 0x437   : > { %v336_v51 = vpop.xlane.xlu1 %335 }
 0x438   : > { %v337_v53 = vcvt.f32.s32 %v336_v51 }
 0x43a   : > { %v340_v54 = vadd.s32 %v339_v52, %v337_v53 }
 0x43c   : > { %v341_v56 = vand.u32 7, %v340_v54  ;;  %v343_v59 = vand.u32 4294967288, %v340_v54 }
 0x43e   : > { %v342_v58 = vsub.s32 7, %v341_v56  ;;  %v349_v63 = vmul.f32 %v343_v59, %v298_v60 }
 0x440   : > { %v345_v61 = vcvt.s32.f32 %v342_v58 }
 0x442   : > { %347 = vst.msk [vmem:[%s879_s17] sm:$0xff] %vm346_vm6, %v345_v61 }
 0x443   : > { %351 = vst.msk [vmem:[%s879_s17] sm:$0xff] %vm350_vm7, %v348_v62 }
 0x444   : > { %353 = vst.msk [vmem:[%s879_s17] sm:$0xff] %vm352_vm8, %v349_v63 }
 0x445   : > { %643 = shalt.err (!%p640_p7)
}
 0x446   : > { %s644_s7 = scalar_lea.hbm %s889_s30, 128  ;;  %s648_s25 = scalar_lea.hbm %s937_s2, 256 }
 0x447   : > { %p645_p9 = scmp.ne.s32.totalorder %s889_s30, %s644_s7  ;;  %p649_p0 = scmp.lt.u32.totalorder %s889_s30, %s937_s2 }
 0x448   : > { %p650_p11 = scmp.lt.u32.totalorder %s648_s25, %s644_s7  ;;  %p652_p4 = scmp.lt.u32.totalorder %s644_s7, %s889_s30 }
 0x449   : > { %p646_p2 = pnand %p645_p9, %p815_p12 }
 0x44a   : > { %p651_p1 = por %p650_p11, %p649_p0 }
 0x44b   : > { %p647_p5 = pneg %p646_p2 }
 0x44c   : > { %p653_p6 = por %p652_p4, %p651_p1 }
 0x44e   : > { %p654_p8 = pnand %p653_p6, %p647_p5 }
 0x450   : > { %657 = shalt.err (!%p654_p8)
}
 0x451   : > { %505 = dma.vmem_to_hbm [thread:$0]  (%p815_p12), %s891_s22, 128, %s889_s30, %s355_s13  }
 0x452 PF: > { %s380_s19 = sand.u32 1, %s688_s9   ;;  %p952_p10 = scmp.ne.s32.totalorder %s942_s16, 0 }
 0x453   : > { %p953_p13 = scmp.ge.s32.totalorder %s700_s12, 2  ;;  %s381_s29 = scalar_lea.sflag [#allocation4], %s380_s19 }
 0x455   : > { %p516_p3 = pnand %p953_p13, %p952_p10 }
 0x457   : > { %683 = dma.done.wait (!%p516_p3), %s381_s29, 128  }
 0x458   : > { %685 = vsyncadd (!%p516_p3), %s381_s29, 4294967168  ;;  %p16_p7 = scmp.ge.s32.totalorder %s780_s21, 4   ;;  %s954_s9 = smov %s692_s10 }
 0x459   : > { %s955_s10 = smov %s696_s11  ;;  %s956_s11 = smov %s811_s8 }
 0x45a   : > { %s957_s12 = smov %s780_s21  ;;  %18 = sbr.rel (!%p16_p7) target bundleno = 6 (0x6), region = 77 }
 0x461   :  { %386 = vsyncpa [#allocation3], 1 }
 0x462   :  { %388 = vsyncpa [#allocation3 + $0x1], 1 }
 0x463   :  { %389 = vsyncpa [#allocation6], 1 }
 0x464   :  { %390 = vsyncpa [#allocation4], 1 }
 0x465   :  { %392 = vsyncpa [#allocation4 + $0x1], 1 }

</bundles_post_ra>
